<compile_context>
chip_gen: v5e
topology: v5e:2x2
jax: 0.10.0
libtpu: 0.0.40
codegen_flags: <defaults>
</compile_context>

<pallas_src>
import jax
import jax.numpy as jnp
from jax.experimental import pallas as pl
from jax.experimental.pallas import tpu as pltpu


# ----------------------------------------------------------------------------
# Helpers
# ----------------------------------------------------------------------------
def _round_up(x, m):
    return ((x + m - 1) // m) * m


def _vmem_budget_bytes():
    """Per-generation VMEM budget for the kernel (leave ~25% headroom)."""
    cap = 64 * 1024 * 1024  # conservative default = v7x physical VMEM
    try:
        info = pltpu.get_tpu_info()
        for name in ("vmem_capacity_bytes", "vmem_size_bytes", "vmem_bytes"):
            v = getattr(info, name, None)
            if v:
                cap = int(v)
                break
    except Exception:
        pass
    # 48 MiB on v7x (64 MiB), capped at 100 MiB on v5e/v6e (128 MiB).
    return min(cap * 3 // 4, 100 * 1024 * 1024)


def _fit_axis(size, align, tile_cap):
    """Split `size` into equal tiles (multiples of `align`, <= ~tile_cap).

    Returns (tile, padded_size, num_tiles) with tile * num_tiles == padded_size
    and padded_size - size minimized (no "pad to next tile multiple" waste).
    """
    padded0 = _round_up(max(size, 1), align)
    cap = max(align, min(tile_cap, padded0))
    n = -(-padded0 // cap)                       # ceil
    tile = _round_up(-(-padded0 // n), align)    # ceil, re-aligned
    return tile, tile * n, n


def _select_tiles(B, IN, OUT, in_bytes, out_bytes, vmem_budget, tile_caps):
    tm_cap, tn_cap, tk_cap = tile_caps
    floors = dict(m=8, n=128, k=128)
    while True:
        tm, Bp, nm = _fit_axis(B, 8, tm_cap)
        tn, OUTp, nn_ = _fit_axis(OUT, 128, tn_cap)
        tk, INp, nk = _fit_axis(IN, 128, tk_cap)
        need = (2 * tm * tk * in_bytes       # x, double-buffered
                + 2 * tk * tn * in_bytes     # W^T, double-buffered
                + 2 * tn * 4                 # bias (f32)
                + 2 * tm * tn * out_bytes    # out, double-buffered
                + tm * tn * 4)               # worst-case f32 acc scratch
        if need <= vmem_budget:
            break
        caps = dict(m=tm_cap, n=tn_cap, k=tk_cap)
        shrinkable = [a for a in ("k", "n", "m") if caps[a] > floors[a]]
        if not shrinkable:
            break  # already at minimum tiles; let the compiler cope
        a = max(shrinkable, key=lambda s: caps[s])
        if a == "k":
            tk_cap = max(floors["k"], tk_cap // 2)
        elif a == "n":
            tn_cap = max(floors["n"], tn_cap // 2)
        else:
            tm_cap = max(floors["m"], tm_cap // 2)

    # v7x megacore: if the whole problem collapsed to a single program, split
    # the batch axis so both TensorCores get work.  Only done when it is free
    # (W/bias block indices don't change -> no re-fetch, no extra padding).
    if nm == 1 and nn_ == 1 and nk == 1 and Bp >= 16 and Bp % 16 == 0:
        tm = Bp // 2
        nm = 2
    return tm, tn, tk, Bp, OUTp, INp, nm, nn_, nk


# ----------------------------------------------------------------------------
# Kernels
# ----------------------------------------------------------------------------
def _sigmoid(z):
    # sigmoid(z) == 0.5 * (tanh(z/2) + 1): one EUP transcendental.
    return 0.5 * (jnp.tanh(0.5 * z) + 1.0)


def _logreg_kernel_fused(x_ref, w_ref, b_ref, o_ref):
    # K grid collapsed (nk == 1): single matmul + bias + sigmoid, no RMW loop.
    z = jnp.dot(x_ref[...], w_ref[...],
                preferred_element_type=jnp.float32) + b_ref[...]
    o_ref[...] = _sigmoid(z).astype(o_ref.dtype)


def _logreg_kernel_acc_inplace(x_ref, w_ref, b_ref, o_ref):
    # f32 output: accumulate directly into the VMEM-resident output tile
    # (its block index ignores k), no scratch and no finalize copy.
    k = pl.program_id(2)

    @pl.when(k == 0)
    def _():
        o_ref[...] = jnp.zeros_like(o_ref)

    o_ref[...] += jnp.dot(x_ref[...], w_ref[...],
                          preferred_element_type=jnp.float32)

    @pl.when(k == pl.num_programs(2) - 1)
    def _():
        o_ref[...] = _sigmoid(o_ref[...] + b_ref[...]).astype(o_ref.dtype)


def _logreg_kernel_acc_scratch(x_ref, w_ref, b_ref, o_ref, acc_ref):
    # Low-precision output: keep an f32 accumulator scratch.
    k = pl.program_id(2)

    @pl.when(k == 0)
    def _():
        acc_ref[...] = jnp.zeros_like(acc_ref)

    acc_ref[...] += jnp.dot(x_ref[...], w_ref[...],
                            preferred_element_type=jnp.float32)

    @pl.when(k == pl.num_programs(2) - 1)
    def _():
        o_ref[...] = _sigmoid(acc_ref[...] + b_ref[...]).astype(o_ref.dtype)


# ----------------------------------------------------------------------------
# Wrapper
# ----------------------------------------------------------------------------
def logistic_regression(x, weight, bias, *, compute_dtype=None,
                        tile_caps=(512, 2048, 2048)):
    """sigmoid(x @ weight.T + bias) via a tiled Pallas TPU kernel.

    x:      (B, IN)
    weight: (OUT, IN)   (PyTorch nn.Linear convention)
    bias:   (OUT,)
    compute_dtype: optional operand dtype (e.g. jnp.bfloat16) to halve HBM
        traffic on this memory-bound kernel; accumulation stays f32 and the
        output keeps the caller's dtype.
    returns (B, OUT) in x.dtype.
    """
    B, IN = x.shape
    OUT, IN2 = weight.shape
    assert IN == IN2 and bias.shape == (OUT,)

    out_dtype = x.dtype
    in_dtype = jnp.dtype(compute_dtype) if compute_dtype is not None else jnp.dtype(x.dtype)

    vmem_budget = _vmem_budget_bytes()
    tm, tn, tk, Bp, OUTp, INp, nm, nn_, nk = _select_tiles(
        B, IN, OUT, in_dtype.itemsize, jnp.dtype(out_dtype).itemsize,
        vmem_budget, tile_caps)

    # One-time weight transpose in HBM: (OUT, IN) -> (IN, OUT) so the kernel
    # is a plain lane-dense (tm,tk)@(tk,tn) matmul (no per-tile transpose).
    w_t = weight.T

    # Pad only when needed (zeros along K are exact; padded rows/cols are
    # sliced off below).  The aligned common case skips the extra pass over x.
    x_p = x if (Bp, INp) == (B, IN) else jnp.pad(x, ((0, Bp - B), (0, INp - IN)))
    w_p = w_t if (INp, OUTp) == (IN, OUT) else jnp.pad(
        w_t, ((0, INp - IN), (0, OUTp - OUT)))
    b_p = bias.astype(jnp.float32)
    if OUTp != OUT:
        b_p = jnp.pad(b_p, (0, OUTp - OUT))
    b_p = b_p.reshape(1, OUTp)

    x_p = x_p.astype(in_dtype)
    w_p = w_p.astype(in_dtype)

    if nk == 1:
        kernel, scratch = _logreg_kernel_fused, []
    elif jnp.dtype(out_dtype) == jnp.float32:
        kernel, scratch = _logreg_kernel_acc_inplace, []
    else:
        kernel, scratch = _logreg_kernel_acc_scratch, [pltpu.VMEM((tm, tn), jnp.float32)]

    out = pl.pallas_call(
        kernel,
        out_shape=jax.ShapeDtypeStruct((Bp, OUTp), out_dtype),
        grid_spec=pltpu.PrefetchScalarGridSpec(
            num_scalar_prefetch=0,
            grid=(nm, nn_, nk),
            in_specs=[
                pl.BlockSpec((tm, tk), lambda i, j, k: (i, k)),   # x tile
                pl.BlockSpec((tk, tn), lambda i, j, k: (k, j)),   # W^T tile (no dep on i)
                pl.BlockSpec((1, tn), lambda i, j, k: (0, j)),    # bias tile
            ],
            out_specs=pl.BlockSpec((tm, tn), lambda i, j, k: (i, j)),
            scratch_shapes=scratch,
        ),
        compiler_params=pltpu.CompilerParams(
            dimension_semantics=("parallel", "parallel", "arbitrary"),
            vmem_limit_bytes=vmem_budget,
        ),
    )(x_p, w_p, b_p)

    return out[:B, :OUT]


# ----------------------------------------------------------------------------
# Demo / correctness check
# ----------------------------------------------------------------------------
if __name__ == "__main__":
    key = jax.random.PRNGKey(0)

    def make_inputs(k, B, IN, OUT, dtype=jnp.float32):
        kx, kw, kb = jax.random.split(k, 3)
        x = jax.random.normal(kx, (B, IN), dtype=jnp.float32).astype(dtype)
        bound = 1.0 / jnp.sqrt(jnp.float32(IN))  # nn.Linear-style init
        w = jax.random.uniform(kw, (OUT, IN), dtype=jnp.float32,
                               minval=-bound, maxval=bound)
        b = jax.random.uniform(kb, (OUT,), dtype=jnp.float32,
                               minval=-bound, maxval=bound)
        return x, w, b

    # 1) Primary case: nn.Linear(32, 16) on a batch of 8 (single fused tile).
    B, IN_FEATURES, OUT_FEATURES = 8, 32, 16
    x, w, b = make_inputs(key, B, IN_FEATURES, OUT_FEATURES)
    out = jax.block_until_ready(logistic_regression(x, w, b))
    ref = jax.nn.sigmoid(x @ w.T + b)
    assert out.shape == (B, OUT_FEATURES)
    assert jnp.allclose(out, ref, atol=1e-5, rtol=1e-5)

    # 2) Multi-tile grid (forces the K-accumulation / multi-batch-tile path).
    k2 = jax.random.PRNGKey(1)
    x2, w2, b2 = make_inputs(k2, 16, 256, 16)
    out2 = jax.block_until_ready(
        logistic_regression(x2, w2, b2, tile_caps=(8, 128, 128)))
    ref2 = jax.nn.sigmoid(x2 @ w2.T + b2)
    assert jnp.allclose(out2, ref2, atol=1e-4, rtol=1e-4)

    # 3) Low-precision output path (f32 scratch accumulator).
    x3 = x2.astype(jnp.bfloat16)
    out3 = jax.block_until_ready(
        logistic_regression(x3, w2, b2, tile_caps=(8, 128, 128)))
    ref3 = jax.nn.sigmoid(x3.astype(jnp.float32)
                          @ w2.astype(jnp.bfloat16).astype(jnp.float32).T + b2)
    assert jnp.allclose(out3.astype(jnp.float32), ref3, atol=2e-2, rtol=2e-2)

    print("KERNEL_OK")
</pallas_src>

<mosaic_0001>
module attributes {stable_mosaic.version = 11 : i64} {
  func.func @_logreg_kernel_fused(%arg0: i32, %arg1: i32, %arg2: i32, %arg3: memref<8x128xf32, #tpu.memory_space<vmem>>, %arg4: memref<128x128xf32, #tpu.memory_space<vmem>>, %arg5: memref<1x128xf32, #tpu.memory_space<vmem>>, %arg6: memref<8x128xf32, #tpu.memory_space<vmem>>) attributes {dimension_semantics = [#tpu.dimension_semantics<parallel>, #tpu.dimension_semantics<parallel>, #tpu.dimension_semantics<arbitrary>], iteration_bounds = array<i64: 1, 1, 1>, scalar_prefetch = 0 : i64, scratch_operands = 0 : i64, tpu.core_type = #tpu.core_type<tc>, window_params = [{transform_indices = @transform_0, window_bounds = array<i64: 8, 128>}, {transform_indices = @transform_1, window_bounds = array<i64: 128, 128>}, {transform_indices = @transform_2, window_bounds = array<i64: 1, 128>}, {transform_indices = @transform_3, window_bounds = array<i64: 8, 128>}]} {
    %c0 = arith.constant 0 : index
    %c0_0 = arith.constant 0 : index
    %0 = vector.load %arg3[%c0, %c0_0] : memref<8x128xf32, #tpu.memory_space<vmem>>, vector<8x128xf32>
    %c0_1 = arith.constant 0 : index
    %c0_2 = arith.constant 0 : index
    %1 = vector.load %arg4[%c0_1, %c0_2] : memref<128x128xf32, #tpu.memory_space<vmem>>, vector<128x128xf32>
    %cst = arith.constant dense<0.000000e+00> : vector<8x128xf32>
    %2 = tpu.matmul %0, %1, %cst {dimension_numbers = #tpu.dot_dimension_numbers<[1], [0], [0], [1], [0, 0, 1, 1], [], []>} : vector<8x128xf32>, vector<128x128xf32>, vector<8x128xf32> -> vector<8x128xf32>
    %c0_3 = arith.constant 0 : index
    %c0_4 = arith.constant 0 : index
    %3 = vector.load %arg5[%c0_3, %c0_4] : memref<1x128xf32, #tpu.memory_space<vmem>>, vector<1x128xf32>
    %4 = vector.broadcast %3 : vector<1x128xf32> to vector<8x128xf32>
    %5 = arith.addf %2, %4 : vector<8x128xf32>
    %cst_5 = arith.constant 5.000000e-01 : f32
    %6 = vector.broadcast %cst_5 : f32 to vector<8x128xf32>
    %7 = arith.mulf %6, %5 : vector<8x128xf32>
    %8 = math.tanh %7 : vector<8x128xf32>
    %cst_6 = arith.constant 1.000000e+00 : f32
    %9 = vector.broadcast %cst_6 : f32 to vector<8x128xf32>
    %10 = arith.addf %8, %9 : vector<8x128xf32>
    %cst_7 = arith.constant 5.000000e-01 : f32
    %11 = vector.broadcast %cst_7 : f32 to vector<8x128xf32>
    %12 = arith.mulf %11, %10 : vector<8x128xf32>
    %c0_8 = arith.constant 0 : index
    %c0_9 = arith.constant 0 : index
    %13 = vector.load %arg6[%c0_8, %c0_9] : memref<8x128xf32, #tpu.memory_space<vmem>>, vector<8x128xf32>
    tpu.vector_store %arg6[%c0_8, %c0_9], %12 {strides = array<i32>} : memref<8x128xf32, #tpu.memory_space<vmem>>, vector<8x128xf32>,
    return
  }
  func.func @transform_0(%arg0: i32, %arg1: i32, %arg2: i32) -> (i32, i32) {
    %c0_i32 = arith.constant 0 : i32
    return %arg0, %arg2 : i32, i32
  }
  func.func @transform_1(%arg0: i32, %arg1: i32, %arg2: i32) -> (i32, i32) {
    %c0_i32 = arith.constant 0 : i32
    return %arg2, %arg1 : i32, i32
  }
  func.func @transform_2(%arg0: i32, %arg1: i32, %arg2: i32) -> (i32, i32) {
    %c0_i32 = arith.constant 0 : i32
    %c0_i32_0 = arith.constant 0 : i32
    return %c0_i32, %arg1 : i32, i32
  }
  func.func @transform_3(%arg0: i32, %arg1: i32, %arg2: i32) -> (i32, i32) {
    %c0_i32 = arith.constant 0 : i32
    return %arg0, %arg1 : i32, i32
  }
}

</mosaic_0001>

<bundles_post_ra>
// kernel: tpu_custom_call.1
= control target key start
LH: loop header
LB: loop body
LE: loop exit
PB: predicated region body
PF: predicated region fallthrough
CT: control target
= control target key end

     0   :  { %8 = vsyncpa [#allocation3], 0  ;;  %s232_s0 = inlined_call_operand.hbm [shape: f32[8,128], index: 0, kind: input, shape index: {}]   ;;  %s233_s1 = inlined_call_operand.hbm [shape: f32[128,128], index: 1, kind: input, shape index: {}]   ;;  %s234_s2 = inlined_call_operand.vmem [shape: f32[1,128], index: 2, kind: input, shape index: {}]   ;;  %s235_s3 = inlined_call_operand.hbm [shape: f32[8,128], index: 3, kind: output, shape index: {}]  }
   0x1   :  { %9 = vsyncpa [#allocation6], 0 }
   0x2   :  { %10 = vsyncpa [#allocation4], 0  ;;  %s16_s14 = sshll.u32 %s232_s0, 4  ;;  %s195_s15 = smov [#allocation2]   ;;  %s17_s14 = int_to_ptr.hbm [resolvable:$true] %s16_s14 }
   0x3   :  { %s18_s16 = sshll.u32 %s195_s15, 4  ;;  %s26_s19 = sshll.u32 %s233_s1, 4  ;;  %s19_s16 = int_to_ptr.vmem [resolvable:$true] %s18_s16  ;;  %s27_s19 = int_to_ptr.hbm [resolvable:$true] %s26_s19 }
   0x4   :  { %21 = dma.hbm_to_vmem [thread:$0]  %s17_s14, 128, %s19_s16, [#allocation3]  }
   0x5   :  { %s196_s20 = smov [#allocation5]   ;;  %s197_s22 = smov 128  }
   0x6   :  { %s28_s21 = sshll.u32 %s196_s20, 4  ;;  %s198_s23 = smov 8   ;;  %s29_s21 = int_to_ptr.vmem [resolvable:$true] %s28_s21 }
   0x7   :  { %34 = dma.hbm_to_vmem [thread:$0]  %s27_s19, 2048, %s29_s21, [#allocation6], %s197_s22, %s197_s22, %s198_s23  }
   0x8   :  { %189 = dma.done.wait [#allocation3], 128  }
   0x9   :  { %190 = vsyncadd [#allocation3], 4294967168 }
   0xa   :  { %191 = dma.done.wait [#allocation6], 2048  }
   0xb   :  { %192 = vsyncadd [#allocation6], 4294965248  ;;  %v61_v0 = vld [vmem:[#allocation5 + $0x78] sm:$0xff]  ;;  %v60_v1 = vld [vmem:[#allocation5 + $0x70] sm:$0xff]  ;;  %s199_s24 = smov [#allocation7]   ;;  %s98_s28 = sshll.u32 %s235_s3, 4  ;;  %s99_s28 = int_to_ptr.hbm [resolvable:$true] %s98_s28 }
   0xc   :  { %66 = vmatpush.msra.mxu0 %v61_v0  ;;  %v59_v2 = vld [vmem:[#allocation5 + $0x68] sm:$0xff]  ;;  %v58_v3 = vld [vmem:[#allocation5 + $0x60] sm:$0xff]  ;;  %v57_v4 = vld [vmem:[#allocation5 + $0x58] sm:$0xff]  ;;  %s96_s25 = sshll.u32 %s199_s24, 4  ;;  %s97_s25 = int_to_ptr.vmem [resolvable:$true] %s96_s25 }
   0xd   :  { %v56_v5 = vld [vmem:[#allocation5 + $0x50] sm:$0xff]  ;;  %v55_v6 = vld [vmem:[#allocation5 + $0x48] sm:$0xff]  ;;  %v54_v7 = vld [vmem:[#allocation5 + $0x40] sm:$0xff] }
   0xe   :  { %67 = vmatpush.msra.mxu0 %v60_v1  ;;  %v53_v8 = vld [vmem:[#allocation5 + $0x38] sm:$0xff]  ;;  %v52_v9 = vld [vmem:[#allocation5 + $0x30] sm:$0xff]  ;;  %v51_v10 = vld [vmem:[#allocation5 + $0x28] sm:$0xff] }
   0xf   :  { %v50_v11 = vld [vmem:[#allocation5 + $0x20] sm:$0xff]  ;;  %v49_v12 = vld [vmem:[#allocation5 + $0x18] sm:$0xff]  ;;  %v48_v13 = vld [vmem:[#allocation5 + $0x10] sm:$0xff] }
  0x10   :  { %68 = vmatpush.msra.mxu0 %v59_v2  ;;  %v47_v14 = vld [vmem:[#allocation5 + $0x8] sm:$0xff]  ;;  %v46_v15 = vld [vmem:[#allocation5] sm:$0xff]  ;;  %v45_v16 = vld [vmem:[#allocation2] sm:$0xff] }
  0x11   :  { %v114_v17 = vld [vmem:[%s234_s2] ss:$0 sm:$0xff] }
  0x12   :  { %69 = vmatpush.msra.mxu0 %v58_v3 }
  0x14   :  { %70 = vmatpush.msra.mxu0 %v57_v4 }
  0x16   :  { %71 = vmatpush.msra.mxu0 %v56_v5 }
  0x18   :  { %72 = vmatpush.msra.mxu0 %v55_v6 }
  0x1a   :  { %73 = vmatpush.msra.mxu0 %v54_v7 }
  0x1c   :  { %74 = vmatpush.msra.mxu0 %v53_v8 }
  0x1e   :  { %75 = vmatpush.msra.mxu0 %v52_v9 }
  0x20   :  { %76 = vmatpush.msra.mxu0 %v51_v10 }
  0x22   :  { %77 = vmatpush.msra.mxu0 %v50_v11 }
  0x24   :  { %78 = vmatpush.msra.mxu0 %v49_v12 }
  0x26   :  { %79 = vmatpush.msra.mxu0 %v48_v13 }
  0x28   :  { %80 = vmatpush.msra.mxu0 %v47_v14 }
  0x2a   :  { %81 = vmatpush.msra.mxu0 %v46_v15 }
  0x2b   :  { %82 = vmatmul.f32.vlgmr.msra.gmra.mxu0 %v45_v16 }
  0xa8   :  { %v83_v18 = vpop.f32.mrf.mxu0 }
  0xa9   :  { %v84_v19 = vadd.f32 %v114_v17, %v83_v18 }
  0xab   :  { %v86_v20 = vmul.f32 0.5, %v84_v19 }
  0xad   :  { %115 = vtanh.f32 %v86_v20 }
  0xb3   :  { %v116_v21 = vpop.eup %115 }
  0xb4   :  { %v88_v22 = vadd.f32 1.0, %v116_v21 }
  0xb6   :  { %v89_v23 = vmul.f32 0.5, %v88_v22 }
  0xb8   :  { %90 = vst [vmem:[#allocation7] sm:$0xff] %v89_v23 }
  0xb9   :  { %101 = dma.vmem_to_hbm [thread:$0]  %s97_s25, 128, %s99_s28, [#allocation4]  }
  0xba   :  { %193 = dma.done.wait [#allocation4], 128  }
  0xbb   :  { %194 = vsyncadd [#allocation4], 4294967168 }
  0xbc   :  { %106 = vsyncpa [#allocation3], 1 }
  0xbd   :  { %107 = vsyncpa [#allocation6], 1 }
  0xbe   :  { %108 = vsyncpa [#allocation4], 1 }

</bundles_post_ra>
